<compile_context>
chip_gen: v6e
topology: v6e:2x2x1
jax: 0.10.0
libtpu: 0.0.40
codegen_flags: <defaults>
</compile_context>

<pallas_src>
import functools

import jax
import jax.numpy as jnp
from jax.experimental import pallas as pl
from jax.experimental.pallas import tpu as pltpu


# ----------------------------------------------------------------------------
# Tile sizing helper
# ----------------------------------------------------------------------------
def _pick_lane_tile(hw, c, itemsize, target_bytes=1 << 20):
    """Largest multiple of 128 dividing hw such that one (1, c, T) block is
    <= target_bytes.  Keeps double-buffered pipelines well under the scoped
    VMEM limit on all of v5e/v6e/v7x while amortizing the ~0.35us per-step
    pipeline overhead with large lane-dense tiles."""
    if hw % 128 != 0:
        # TODO(synk): non-128-aligned H*W falls back to one full-width block;
        # could exceed VMEM for very large unaligned images.
        return hw
    n_lane_groups = hw // 128
    max_groups = max(1, target_bytes // (c * itemsize * 128))
    best = 1
    for d in range(1, n_lane_groups + 1):
        if n_lane_groups % d == 0 and d <= max_groups:
            best = d
    return best * 128


# ----------------------------------------------------------------------------
# Pallas kernel 1: noised = input + noise * sigma[b]   (+ optional c_in fusion)
# ----------------------------------------------------------------------------
def _noise_kernel(sig_ref, x_ref, n_ref, o_ref):
    b = pl.program_id(0)
    sig = sig_ref[b]                      # f32 scalar from SMEM
    noised = x_ref[...].astype(jnp.float32) + n_ref[...].astype(jnp.float32) * sig
    o_ref[...] = noised.astype(o_ref.dtype)


def _noise_cin_kernel(sig_ref, cin_ref, x_ref, n_ref, o_ref, s_ref):
    b = pl.program_id(0)
    sig = sig_ref[b]                      # f32 scalars from SMEM
    c_in = cin_ref[b]
    noised = x_ref[...].astype(jnp.float32) + n_ref[...].astype(jnp.float32) * sig
    o_ref[...] = noised.astype(o_ref.dtype)
    s_ref[...] = (noised * c_in).astype(s_ref.dtype)   # fused denoiser pre-scale


def get_noised_input_pallas(input_bchw, noise_bchw, sigmas,
                            with_cin_scaled=False, lane_tile=None):
    B, C, H, W = input_bchw.shape
    HW = H * W
    x = input_bchw.reshape(B, C, HW)
    n = noise_bchw.reshape(B, C, HW)
    sig = sigmas.astype(jnp.float32).reshape(B)

    itemsize = jnp.dtype(x.dtype).itemsize
    T = lane_tile if lane_tile is not None else _pick_lane_tile(HW, C, itemsize)
    assert HW % T == 0
    grid = (B, HW // T)

    blk = pl.BlockSpec((1, C, T), lambda b, k: (b, 0, k))
    smem = pl.BlockSpec(memory_space=pltpu.MemorySpace.SMEM)
    cparams = pltpu.CompilerParams(
        dimension_semantics=("parallel", "parallel"),
        vmem_limit_bytes=32 * 1024 * 1024)

    if with_cin_scaled:
        c_in = (1.0 / jnp.sqrt(sig * sig + 1.0)).astype(jnp.float32)
        noised, scaled = pl.pallas_call(
            _noise_cin_kernel,
            out_shape=(jax.ShapeDtypeStruct((B, C, HW), x.dtype),
                       jax.ShapeDtypeStruct((B, C, HW), x.dtype)),
            grid=grid,
            in_specs=[smem, smem, blk, blk],
            out_specs=(blk, blk),
            compiler_params=cparams,
        )(sig, c_in, x, n)
        return noised.reshape(B, C, H, W), scaled.reshape(B, C, H, W)

    noised = pl.pallas_call(
        _noise_kernel,
        out_shape=jax.ShapeDtypeStruct((B, C, HW), x.dtype),
        grid=grid,
        in_specs=[smem, blk, blk],
        out_specs=blk,
        compiler_params=cparams,
    )(sig, x, n)
    return noised.reshape(B, C, H, W)


# ----------------------------------------------------------------------------
# Pallas kernel 2: per-batch weighted loss reduction
#   l2: mean(w[b] * (out - target)^2)    l1: mean(w[b] * |out - target|)
# ----------------------------------------------------------------------------
def _loss_kernel(w_ref, mo_ref, tgt_ref, loss_ref, acc_ref, *, loss_type, inv_n):
    b = pl.program_id(0)
    k = pl.program_id(1)

    @pl.when(k == 0)
    def _():
        acc_ref[...] = jnp.zeros_like(acc_ref)

    diff = mo_ref[...].astype(jnp.float32) - tgt_ref[...].astype(jnp.float32)
    if loss_type == "l2":
        val = diff * diff
    elif loss_type == "l1":
        val = jnp.abs(diff)
    else:
        raise NotImplementedError(loss_type)

    # Block-shaped accumulator: pure VPU adds every step; the expensive
    # cross-lane/sublane reduce happens exactly once per batch below.
    acc_ref[...] += val

    @pl.when(k == pl.num_programs(1) - 1)
    def _():
        total = jnp.sum(acc_ref[...], keepdims=True)          # (1, 1, 1)
        loss_ref[...] = total * (w_ref[b] * inv_n)


def weighted_loss_pallas(model_output, target, w, loss_type, lane_tile=None):
    B, C, H, W = target.shape
    HW = H * W
    mo = model_output.reshape(B, C, HW)
    tgt = target.reshape(B, C, HW)
    w_s = w.astype(jnp.float32).reshape(B)

    itemsize = jnp.dtype(mo.dtype).itemsize
    T = lane_tile if lane_tile is not None else _pick_lane_tile(HW, C, itemsize)
    assert HW % T == 0
    inv_n = 1.0 / float(C * HW)

    kernel = functools.partial(_loss_kernel, loss_type=loss_type, inv_n=inv_n)
    blk = pl.BlockSpec((1, C, T), lambda b, k: (b, 0, k))
    out = pl.pallas_call(
        kernel,
        out_shape=jax.ShapeDtypeStruct((B, 1, 1), jnp.float32),
        grid=(B, HW // T),
        in_specs=[
            pl.BlockSpec(memory_space=pltpu.MemorySpace.SMEM),   # w[b] scalars
            blk,
            blk,
        ],
        out_specs=pl.BlockSpec((1, 1, 1), lambda b, k: (b, 0, 0)),
        scratch_shapes=[pltpu.VMEM((1, C, T), jnp.float32)],
        compiler_params=pltpu.CompilerParams(
            dimension_semantics=("parallel", "arbitrary"),
            vmem_limit_bytes=32 * 1024 * 1024),
    )(w_s, mo, tgt)
    return out.reshape(B)


# ----------------------------------------------------------------------------
# Plain-JAX glue: stand-ins for the external modules (network / denoiser) that
# are passed to forward() in the original; not part of this module's params.
# ----------------------------------------------------------------------------
def make_standin_network(C):
    # deterministic 1x1-conv "network" + tiny noise-level conditioning
    w = jnp.eye(C, dtype=jnp.float32) + 0.01 * (
        jnp.arange(C * C, dtype=jnp.float32).reshape(C, C) / (C * C)
    )

    def net(x, c_noise, cond):
        y = jnp.einsum("oc,bchw->bohw", w, x)
        return y + 0.001 * c_noise.reshape(-1, 1, 1, 1)

    return net


def denoiser_apply(network, noised, sigmas, cond, scaled_input=None, **kwargs):
    # EpsScaling-style denoiser preconditioning (external Denoiser module).
    # `scaled_input`, if given, is noised * c_in precomputed (fused) inside the
    # Pallas noise kernel — numerically identical to computing it here.
    sig = sigmas.astype(noised.dtype)
    c_skip = jnp.ones_like(sig)
    c_out = -sig
    c_noise = sig

    def ap(c):  # append_dims
        return c.reshape(c.shape + (1,) * (noised.ndim - c.ndim))

    if scaled_input is None:
        c_in = 1.0 / jnp.sqrt(sig ** 2 + 1.0)
        scaled_input = noised * ap(c_in)
    return network(scaled_input, c_noise, cond) * ap(c_out) + noised * ap(c_skip)


# ----------------------------------------------------------------------------
# StandardDiffusionLoss (JAX version)
# ----------------------------------------------------------------------------
class StandardDiffusionLoss:
    def __init__(self, loss_type="l2", offset_noise_level=0.0, num_frames=1,
                 p_mean=-1.2, p_std=1.2, batch2model_keys=None):
        # sigma_sampler_config -> EDMSampling(p_mean, p_std)
        # loss_weighting_config -> EpsWeighting (w = sigma ** -2)
        assert loss_type in ["l2", "l1"]  # TODO(synk): 'lpips' needs a pretrained VGG LPIPS network
        self.loss_type = loss_type
        self.offset_noise_level = offset_noise_level
        self.num_frames = num_frames
        self.p_mean = p_mean
        self.p_std = p_std
        if not batch2model_keys:
            batch2model_keys = []
        if isinstance(batch2model_keys, str):
            batch2model_keys = [batch2model_keys]
        self.batch2model_keys = set(batch2model_keys)

    # ---- external-config stand-ins -------------------------------------
    def sigma_sampler(self, key, b):
        return jnp.exp(self.p_mean + self.p_std * jax.random.normal(key, (b,), jnp.float32))

    def loss_weighting(self, sigmas):
        return sigmas ** -2.0

    # ---- module methods -------------------------------------------------
    def get_noised_input(self, sigmas, noise, input):
        return get_noised_input_pallas(input, noise, sigmas)          # Pallas kernel

    def get_loss(self, model_output, target, w):
        return weighted_loss_pallas(model_output, target, w, self.loss_type)  # Pallas kernel

    def _forward(self, network, denoiser, cond, input, batch, key):
        additional_model_inputs = {
            k: batch[k] for k in self.batch2model_keys.intersection(batch)
        }
        B = input.shape[0]
        b = B // self.num_frames
        k_sig, k_noise = jax.random.split(key)

        sigmas = self.sigma_sampler(k_sig, b).astype(input.dtype)
        sigmas = jnp.repeat(sigmas, self.num_frames)                    # 'b -> (b t)'

        noise = jax.random.normal(k_noise, input.shape, input.dtype)
        if self.offset_noise_level > 0.0:
            # TODO(synk): reference uses undefined self.n_frames; we follow its
            # intent with num_frames for the per-frame offset-noise shape.
            k_noise, k_off = jax.random.split(k_noise)
            offset_shape = ((B, 1, input.shape[2]) if self.num_frames is not None
                            else (B, input.shape[1]))
            off = jax.random.normal(k_off, offset_shape, input.dtype)
            off = off.reshape(off.shape + (1,) * (input.ndim - off.ndim))
            noise = noise + self.offset_noise_level * off

        # Fused Pallas kernel: noised = input + noise*sigma AND noised * c_in
        # (saves one full-tensor HBM pass in the denoiser preconditioning).
        noised_input, noised_scaled = get_noised_input_pallas(
            input, noise, sigmas, with_cin_scaled=True)

        new_cond = {}
        for k in ["crossattn", "concat", "vector"]:
            c = cond[k]
            c = jnp.repeat(c[:, None], self.num_frames, axis=1)  # 'b ... -> b t ...'
            c = c.reshape((-1,) + c.shape[2:])                   # '(b t) ...'
            if c.shape[0] >= 2:
                # host-side sanity check mirroring the reference assert
                assert bool(jnp.array_equal(c[0], c[1])), "error, dim is not match.."
            new_cond[k] = c

        model_output = denoiser(network, noised_input, sigmas, new_cond,
                                scaled_input=noised_scaled,
                                **additional_model_inputs)
        w = self.loss_weighting(sigmas)   # per-batch scalar; applied inside loss kernel
        return self.get_loss(model_output, input, w)

    def __call__(self, network, denoiser, cond, input, batch, key):
        return self._forward(network, denoiser, cond, input, batch, key)


# ----------------------------------------------------------------------------
if __name__ == "__main__":
    key = jax.random.PRNGKey(0)
    num_frames = 2
    B, C, H, W = 4, 4, 16, 16          # batch = b(2) * num_frames(2)
    b = B // num_frames
    k_in, k_ca, k_cc, k_cv, k_fwd = jax.random.split(key, 5)

    x = jax.random.normal(k_in, (B, C, H, W), jnp.float32)
    cond = {
        "crossattn": jax.random.normal(k_ca, (b, 8, 32), jnp.float32),
        "concat": jax.random.normal(k_cc, (b, C, H, W), jnp.float32),
        "vector": jax.random.normal(k_cv, (b, 32), jnp.float32),
    }
    batch = {}

    loss_mod = StandardDiffusionLoss(loss_type="l2", offset_noise_level=0.0,
                                     num_frames=num_frames)
    network = make_standin_network(C)

    loss = loss_mod(network, denoiser_apply, cond, x, batch, k_fwd)
    loss = jax.block_until_ready(loss)
    assert loss.shape == (B,)

    # ---- standalone correctness checks of the Pallas kernels vs plain jnp ----
    sig_t = jnp.array([0.5, 1.5, 2.0, 0.1], jnp.float32)
    noi = jax.random.normal(jax.random.PRNGKey(1), x.shape, jnp.float32)

    # noise kernel (plain)
    got_noised = jax.block_until_ready(get_noised_input_pallas(x, noi, sig_t))
    ref_noised = x + noi * sig_t.reshape(-1, 1, 1, 1)
    assert jnp.allclose(got_noised, ref_noised, atol=1e-5)

    # noise kernel (fused c_in output, plus small-tile multi-k path)
    got_n2, got_s2 = get_noised_input_pallas(x, noi, sig_t,
                                             with_cin_scaled=True, lane_tile=128)
    got_n2, got_s2 = jax.block_until_ready((got_n2, got_s2))
    c_in_ref = (1.0 / jnp.sqrt(sig_t ** 2 + 1.0)).reshape(-1, 1, 1, 1)
    assert jnp.allclose(got_n2, ref_noised, atol=1e-5)
    assert jnp.allclose(got_s2, ref_noised * c_in_ref, atol=1e-5)

    # loss kernel
    w_t = sig_t ** -2.0
    ref_l2 = jnp.mean((w_t.reshape(-1, 1, 1, 1) * (got_noised - x) ** 2)
                      .reshape(B, -1), axis=1)
    ref_l1 = jnp.mean((w_t.reshape(-1, 1, 1, 1) * jnp.abs(got_noised - x))
                      .reshape(B, -1), axis=1)

    got_l2 = jax.block_until_ready(weighted_loss_pallas(got_noised, x, w_t, "l2"))
    assert jnp.allclose(got_l2, ref_l2, rtol=1e-5, atol=1e-6)

    # force multiple reduction steps (lane_tile=128 -> 2 k-steps per batch)
    got_l2_tiled = jax.block_until_ready(
        weighted_loss_pallas(got_noised, x, w_t, "l2", lane_tile=128))
    assert jnp.allclose(got_l2_tiled, ref_l2, rtol=1e-5, atol=1e-6)

    got_l1 = jax.block_until_ready(weighted_loss_pallas(got_noised, x, w_t, "l1"))
    assert jnp.allclose(got_l1, ref_l1, rtol=1e-5, atol=1e-6)

    print("KERNEL_OK")
</pallas_src>

<mosaic_0001>
module attributes {stable_mosaic.version = 11 : i64} {
  func.func @_noise_cin_kernel(%arg0: i32, %arg1: i32, %arg2: memref<4xf32, #tpu.memory_space<smem>>, %arg3: memref<4xf32, #tpu.memory_space<smem>>, %arg4: memref<1x4x256xf32, #tpu.memory_space<vmem>>, %arg5: memref<1x4x256xf32, #tpu.memory_space<vmem>>, %arg6: memref<1x4x256xf32, #tpu.memory_space<vmem>>, %arg7: memref<1x4x256xf32, #tpu.memory_space<vmem>>) attributes {dimension_semantics = [#tpu.dimension_semantics<parallel>, #tpu.dimension_semantics<parallel>], iteration_bounds = array<i64: 4, 1>, scalar_prefetch = 0 : i64, scratch_operands = 0 : i64, tpu.core_type = #tpu.core_type<tc>, window_params = [{transform_indices = @transform_0, window_bounds = array<i64: 4>}, {transform_indices = @transform_1, window_bounds = array<i64: 4>}, {transform_indices = @transform_2, window_bounds = array<i64: 1, 4, 256>}, {transform_indices = @transform_3, window_bounds = array<i64: 1, 4, 256>}, {transform_indices = @transform_4, window_bounds = array<i64: 1, 4, 256>}, {transform_indices = @transform_5, window_bounds = array<i64: 1, 4, 256>}]} {
    %0 = arith.index_cast %arg0 : i32 to index
    %1 = memref.load %arg2[%0] : memref<4xf32, #tpu.memory_space<smem>>
    %2 = arith.index_cast %arg0 : i32 to index
    %3 = memref.load %arg3[%2] : memref<4xf32, #tpu.memory_space<smem>>
    %c0 = arith.constant 0 : index
    %c0_0 = arith.constant 0 : index
    %c0_1 = arith.constant 0 : index
    %4 = vector.load %arg4[%c0, %c0_0, %c0_1] : memref<1x4x256xf32, #tpu.memory_space<vmem>>, vector<1x4x256xf32>
    %c0_2 = arith.constant 0 : index
    %c0_3 = arith.constant 0 : index
    %c0_4 = arith.constant 0 : index
    %5 = vector.load %arg5[%c0_2, %c0_3, %c0_4] : memref<1x4x256xf32, #tpu.memory_space<vmem>>, vector<1x4x256xf32>
    %6 = vector.broadcast %1 : f32 to vector<1x4x256xf32>
    %7 = arith.mulf %5, %6 : vector<1x4x256xf32>
    %8 = arith.addf %4, %7 : vector<1x4x256xf32>
    %c0_5 = arith.constant 0 : index
    %c0_6 = arith.constant 0 : index
    %c0_7 = arith.constant 0 : index
    %9 = vector.load %arg6[%c0_5, %c0_6, %c0_7] : memref<1x4x256xf32, #tpu.memory_space<vmem>>, vector<1x4x256xf32>
    tpu.vector_store %arg6[%c0_5, %c0_6, %c0_7], %8 {strides = array<i32>} : memref<1x4x256xf32, #tpu.memory_space<vmem>>, vector<1x4x256xf32>,
    %10 = vector.broadcast %3 : f32 to vector<1x4x256xf32>
    %11 = arith.mulf %8, %10 : vector<1x4x256xf32>
    %c0_8 = arith.constant 0 : index
    %c0_9 = arith.constant 0 : index
    %c0_10 = arith.constant 0 : index
    %12 = vector.load %arg7[%c0_8, %c0_9, %c0_10] : memref<1x4x256xf32, #tpu.memory_space<vmem>>, vector<1x4x256xf32>
    tpu.vector_store %arg7[%c0_8, %c0_9, %c0_10], %11 {strides = array<i32>} : memref<1x4x256xf32, #tpu.memory_space<vmem>>, vector<1x4x256xf32>,
    return
  }
  func.func @transform_0(%arg0: i32, %arg1: i32) -> i32 {
    %c0_i32 = arith.constant 0 : i32
    %c0_i32_0 = arith.constant 0 : i32
    return %c0_i32 : i32
  }
  func.func @transform_1(%arg0: i32, %arg1: i32) -> i32 {
    %c0_i32 = arith.constant 0 : i32
    %c0_i32_0 = arith.constant 0 : i32
    return %c0_i32 : i32
  }
  func.func @transform_2(%arg0: i32, %arg1: i32) -> (i32, i32, i32) {
    %c0_i32 = arith.constant 0 : i32
    %c0_i32_0 = arith.constant 0 : i32
    return %arg0, %c0_i32, %arg1 : i32, i32, i32
  }
  func.func @transform_3(%arg0: i32, %arg1: i32) -> (i32, i32, i32) {
    %c0_i32 = arith.constant 0 : i32
    %c0_i32_0 = arith.constant 0 : i32
    return %arg0, %c0_i32, %arg1 : i32, i32, i32
  }
  func.func @transform_4(%arg0: i32, %arg1: i32) -> (i32, i32, i32) {
    %c0_i32 = arith.constant 0 : i32
    %c0_i32_0 = arith.constant 0 : i32
    return %arg0, %c0_i32, %arg1 : i32, i32, i32
  }
  func.func @transform_5(%arg0: i32, %arg1: i32) -> (i32, i32, i32) {
    %c0_i32 = arith.constant 0 : i32
    %c0_i32_0 = arith.constant 0 : i32
    return %arg0, %c0_i32, %arg1 : i32, i32, i32
  }
}

</mosaic_0001>

<bundles_post_ra>
// kernel: tpu_custom_call.1
= control target key start
LH: loop header
LB: loop body
LE: loop exit
PB: predicated region body
PF: predicated region fallthrough
CT: control target
= control target key end

     0   :  { %s1174_s0 = inlined_call_operand.hbm [shape: f32[4], index: 0, kind: input, shape index: {}]   ;;  %s1175_s1 = inlined_call_operand.vmem [shape: f32[4], index: 1, kind: input, shape index: {}]   ;;  %s1176_s2 = inlined_call_operand.hbm [shape: f32[4,4,256], index: 2, kind: input, shape index: {}]   ;;  %s1177_s3 = inlined_call_operand.hbm [shape: f32[4,4,256], index: 3, kind: input, shape index: {}]   ;;  %s1178_s4 = inlined_call_operand.hbm [shape: f32[4,4,256], index: 4, kind: output, shape index: {0}]   ;;  %s1179_s5 = inlined_call_operand.hbm [shape: f32[4,4,256], index: 5, kind: output, shape index: {1}]  }
   0x1   :  { %1182 = sst [smem:[#allocation22_spill]] %s1174_s0 }
   0x2   :  { %1183 = sst [smem:[#allocation23_spill]] %s1175_s1 }
   0x3   :  { %1184 = sst [smem:[#allocation24_spill]] %s1176_s2 }
   0x4   :  { %11 = vsyncpa [#allocation5], 0 }
   0x5   :  { %12 = vsyncpa [#allocation6], 0 }
   0x6   :  { %13 = vsyncpa [#allocation3], 0 }
   0x7   :  { %15 = vsyncpa [#allocation3 + $0x1], 0 }
   0x8   :  { %16 = vsyncpa [#allocation10], 0 }
   0x9   :  { %18 = vsyncpa [#allocation10 + $0x1], 0 }
   0xa   :  { %19 = vsyncpa [#allocation4], 0 }
   0xb   :  { %21 = vsyncpa [#allocation4 + $0x1], 0 }
   0xc   :  { %22 = vsyncpa [#allocation13], 0 }
   0xd   :  { %24 = vsyncpa [#allocation13 + $0x1], 0  ;;  %s927_s18 = smov 0   ;;  %s929_s19 = smov 0  }
   0xe   :  { %s931_s20 = smov 0   ;;  %s933_s21 = smov 0  }
   0xf   :  { %s935_s22 = smov 0   ;;  %s937_s23 = smov 0  }
  0x10 LB: > { %1185 = sst [smem:[#allocation20_spill]] %s885_s22  ;;  %s561_s24 = sadd.s32 4294967295, %s889_s23   ;;  %s889_s23 = sphi %s937_s23, %s30_s23   ;;  %s885_s22 = sphi %s935_s22, %s1201_s22   ;;  %s881_s21 = sphi %s933_s21, %s1200_s21   ;;  %s877_s20 = sphi %s931_s20, %s1204_s20   ;;  %s873_s19 = sphi %s929_s19, %s1203_s19   ;;  %s869_s18 = sphi %s927_s18, %s1202_s18  }
  0x11   : > { %s562_s25 = sadd.s32 4294967294, %s889_s23   ;;  %p106_p0 = scmp.ne.s32.totalorder %s873_s19, %s869_s18 }
  0x12   : > { %p961_p1 = scmp.eq.s32.totalorder %s561_s24, 0  ;;  %p965_p2 = scmp.eq.s32.totalorder %s561_s24, 3 }
  0x13   : > { %p166_p3 = scmp.eq.s32.totalorder %s562_s25, 3  ;;  %p563_p5 = scmp.ge.s32.totalorder %s889_s23, 1 }
  0x14   : > { %p971_p4 = por %p961_p1, %p106_p0  ;;  %p201_p7 = scmp.lt.s32.totalorder %s889_s23, 5 }
  0x15   : > { %p976_p6 = por %p166_p3, %p106_p0  ;;  %s1191_s1 = sld [smem:[#allocation23_spill]] }
  0x16   : > { %p981_p8 = pnand %p563_p5, %p201_p7  ;;  %s42_s10 = sadd.s32 1, %s885_s22 }
  0x17   : > { %s1189_s29 = scalar_select %p976_p6, 1, 0 }
  0x18   : > { %p608_p9 = pneg %p981_p8  ;;  %p997_p11 = scmp.ge.s32.totalorder %s42_s10, 4 }
  0x19   : > { %s891_s12 = smov [#allocation2]   ;;  %s1194_s0 = sld [smem:[#allocation22_spill]] }
  0x1a   : > { %p992_p10 = pnand %p608_p9, %p961_p1 }
  0x1b   : > { %s223_s8 = sshll.u32 %s1191_s1, 4  ;;  %s224_s8 = int_to_ptr.vmem [resolvable:$true] %s223_s8 }
  0x1c   : > { %s696_s15 = scalar_lea.vmem %s224_s8, 16  ;;  %p698_p13 = pneg %p992_p10 }
  0x1d   : > { %p697_p12 = scmp.ne.s32.totalorder %s224_s8, %s696_s15  ;;  %p704_p5 = scmp.lt.s32.totalorder %s224_s8, %s224_s8 }
  0x1e   : > { %p705_p7 = scmp.lt.s32.totalorder %s696_s15, %s696_s15 }
  0x1f   : > { %611 = dma.hbm_to_smem (!%p992_p10), %s1194_s0, 16, %s891_s12, [#allocation5]  }
  0x20   : > { %p699_p0 = pnand %p698_p13, %p697_p12  ;;  %p706_p9 = por %p705_p7, %p704_p5 }
  0x22   : > { %p700_p3 = pneg %p699_p0 }
  0x24   : > { %p707_p6 = pnand %p706_p9, %p700_p3 }
  0x26   : > { %710 = shalt.err (!%p707_p6)
}
  0x27   : > { %s892_s16 = smov [#allocation7]   ;;  %s1206_s10 = smov (%p997_p11, %s42_s10), 0 }
  0x28   : > { %614 = dma.vmem_to_smem (!%p992_p10), %s224_s8, 16, %s892_s16, [#allocation6]  }
  0x29   : > { %1195 = sst [smem:[#allocation21_spill]] %s1206_s10  ;;  %s93_s17 = sadd.s32 1, %s877_s20 }
  0x2a   : > { %p100_p6 = scmp.ne.s32.totalorder %s877_s20, %s873_s19  ;;  %s88_s24 = ssub.s32 %s885_s22, %s1206_s10 }
  0x2b   : > { %p101_p12 = scmp.eq.s32.totalorder %s889_s23, 0  ;;  %p91_p13 = scmp.eq.s32.totalorder %s88_s24, 0 }
  0x2c   : > { %p1022_p0 = por %p965_p2, %p100_p6  ;;  %p631_p5 = scmp.lt.s32.totalorder %s889_s23, 4 }
  0x2d   : > { %p102_p3 = por %p101_p12, %p100_p6  ;;  %s1031_s7 = sand.u32 1, %s877_s20  }
  0x2e   : > { %s1028_s6 = scalar_select %p91_p13, %s877_s20, %s93_s17  }
  0x2f   : > { %s588_s8 = sshll.u32 %s885_s22, 7  ;;  %s567_s9 = sshll.u32 %s1031_s7, 3 }
  0x30   : > { %s1197_s2 = sld [smem:[#allocation24_spill]]  ;;  %s238_s14 = scalar_lea.vmem [#allocation8], %s567_s9 }
  0x31   : > { %s248_s27 = sshll.u32 %s238_s14, 4  ;;  %p1038_p2 = pnand %p631_p5, %p102_p3  ;;  %s249_s27 = int_to_ptr.vmem [resolvable:$true] %s248_s27 }
  0x32   : > { %s235_s16 = scalar_lea.sflag [#allocation3], %s1031_s7  ;;  %s724_s17 = scalar_lea.vmem %s249_s27, 128 }
  0x33   : > { %p713_p10 = pneg %p1038_p2  ;;  %p725_p11 = scmp.ne.s32.totalorder %s249_s27, %s724_s17 }
  0x34   : > { %s893_s24 = smov [#allocation8]  }
  0x35   : > { %p727_p7 = pnand %p725_p11, %p713_p10  ;;  %s729_s11 = sshll.u32 %s893_s24, 4  ;;  %s730_s11 = int_to_ptr.vmem [resolvable:$false] %s729_s11 }
  0x36   : > { %s246_s13 = scalar_lea.hbm %s1197_s2, %s588_s8  ;;  %s731_s12 = scalar_lea.vmem %s730_s11, 256 }
  0x37   : > { %p728_p9 = pneg %p727_p7  ;;  %p732_p6 = scmp.lt.s32.totalorder %s249_s27, %s730_s11 }
  0x38   : > { %p733_p12 = scmp.lt.s32.totalorder %s731_s12, %s724_s17 }
  0x3a   : > { %p734_p13 = por %p733_p12, %p732_p6 }
  0x3c   : > { %p735_p3 = pnand %p734_p13, %p728_p9 }
  0x3e   : > { %738 = shalt.err (!%p735_p3)
}
  0x3f   : > { %618 = dma.hbm_to_vmem [thread:$0]  (!%p1038_p2), %s246_s13, 128, %s249_s27, %s235_s16  }
  0x40   : > { %s267_s1 = scalar_lea.hbm %s1177_s3, %s588_s8  ;;  %s259_s2 = scalar_lea.vmem [#allocation9], %s567_s9 }
  0x41   : > { %s269_s10 = sshll.u32 %s259_s2, 4  ;;  %s256_s24 = scalar_lea.sflag [#allocation10], %s1031_s7  ;;  %s270_s10 = int_to_ptr.vmem [resolvable:$true] %s269_s10 }
  0x42   : > { %s752_s22 = scalar_lea.vmem %s270_s10, 128  ;;  %s894_s17 = smov [#allocation9]  }
  0x43   : > { %p753_p5 = scmp.ne.s32.totalorder %s270_s10, %s752_s22  ;;  %s757_s11 = sshll.u32 %s894_s17, 4  ;;  %s758_s11 = int_to_ptr.vmem [resolvable:$false] %s757_s11 }
  0x44   : > { %s759_s12 = scalar_lea.vmem %s758_s11, 256  ;;  %p760_p9 = scmp.lt.s32.totalorder %s270_s10, %s758_s11 }
  0x45   : > { %p755_p11 = pnand %p753_p5, %p713_p10  ;;  %p761_p6 = scmp.lt.s32.totalorder %s759_s12, %s752_s22 }
  0x47   : > { %p756_p7 = pneg %p755_p11  ;;  %p762_p12 = por %p761_p6, %p760_p9 }
  0x49   : > { %p763_p13 = pnand %p762_p12, %p756_p7 }
  0x4b   : > { %766 = shalt.err (!%p763_p13)
}
  0x4c   : > { %621 = dma.hbm_to_vmem [thread:$0]  (!%p1038_p2), %s267_s1, 128, %s270_s10, %s256_s24  }
  0x4d   : > { %278 = sbr.rel (%p981_p8) target bundleno = 141 (0x8d), region = 36 }
  0x52   : > { %844 = dma.done.wait (%p961_p1), [#allocation5], 16  }
  0x53   : > { %846 = vsyncadd (%p961_p1), [#allocation5], 4294967280 }
  0x54   : > { %848 = dma.done.wait (%p961_p1), [#allocation6], 16  }
  0x55   : > { %850 = vsyncadd (%p961_p1), [#allocation6], 4294967280  ;;  %s1070_s0 = sand.u32 1, %s873_s19  }
  0x56   : > { %s1073_s1 = sshll.u32 %s1070_s0, 3  ;;  %s289_s2 = scalar_lea.sflag [#allocation3], %s1070_s0 }
  0x57   : > { %s292_s22 = scalar_lea.vmem [#allocation8], %s1073_s1 }
  0x58   : > { %852 = dma.done.wait (%p971_p4), %s289_s2, 128  }
  0x59   : > { %854 = vsyncadd (%p971_p4), %s289_s2, 4294967168  ;;  %s298_s26 = scalar_lea.sflag [#allocation10], %s1070_s0  ;;  %s301_s30 = scalar_lea.vmem [#allocation9], %s1073_s1 }
  0x5a   : > { %856 = dma.done.wait (%p971_p4), %s298_s26, 128  }
  0x5b   : > { %858 = vsyncadd (%p971_p4), %s298_s26, 4294967168 }
  0x5c   : > { %306 = sfence }
  0x5d   : > { %s343_s10 = sld [smem:[#allocation2 + %s881_s21]]  ;;  %v346_v0 = vld [vmem:[%s301_s30] sm:$0xff]  ;;  %s331_s8 = scalar_lea.vmem [#allocation11], %s1073_s1  ;;  %v345_v1 = vld [vmem:[%s292_s22] sm:$0xff] }
  0x5e   : > { %s344_s7 = sld [smem:[#allocation7 + %s881_s21]]  ;;  %s376_s9 = sshll.u32 %s331_s8, 4  ;;  %s1094_s9 = int_to_ptr.vmem [resolvable:$true] %s376_s9 }
  0x5f   : > { %s590_s13 = sshll.u32 %s881_s21, 7  ;;  %s338_s28 = scalar_lea.vmem [#allocation12], %s1073_s1 }
  0x60   : > { %s392_s27 = sshll.u32 %s338_s28, 4  ;;  %s1099_s14 = scalar_lea.hbm %s1178_s4, %s590_s13  ;;  %s1101_s27 = int_to_ptr.vmem [resolvable:$true] %s392_s27 }
  0x61   : > { %s1106_s17 = scalar_lea.hbm %s1179_s5, %s590_s13  ;;  %s355_s11 = scalar_lea.sflag [#allocation4], %s1070_s0 }
  0x62   : > { %s767_s12 = scalar_lea.vmem %s1094_s9, 128  ;;  %s895_s2 = smov [#allocation11]  }
  0x63   : > { %v347_v2 = vstv %s343_s10  ;;  %p768_p1 = scmp.ne.s32.totalorder %s1094_s9, %s767_s12  ;;  %s771_s22 = sshll.u32 %s895_s2, 4  ;;  %s772_s22 = int_to_ptr.vmem [resolvable:$false] %s771_s22 }
  0x64   : > { %v348_v3 = vmul.f32 %v347_v2, %v346_v0  ;;  %v351_v4 = vstv %s344_s7  ;;  %s773_s26 = scalar_lea.vmem %s772_s22, 256  ;;  %p774_p2 = scmp.lt.s32.totalorder %s1094_s9, %s772_s22 }
  0x65   : > { %p769_p4 = pnand %p768_p1, %p1022_p0  ;;  %p775_p10 = scmp.lt.s32.totalorder %s773_s26, %s767_s12 }
  0x66   : > { %v349_v5 = vadd.f32 %v348_v3, %v345_v1 }
  0x67   : > { %p770_p8 = pneg %p769_p4  ;;  %p776_p3 = por %p775_p10, %p774_p2 }
  0x68   : > { %350 = vst [vmem:[%s331_s8] sm:$0xff] %v349_v5  ;;  %v352_v6 = vmul.f32 %v351_v4, %v349_v5 }
  0x69   : > { %p777_p5 = pnand %p776_p3, %p770_p8 }
  0x6b   : > { %780 = shalt.err (!%p777_p5)
}
  0x6c   : > { %s781_s30 = scalar_lea.hbm %s1099_s14, 128  ;;  %s785_s8 = scalar_lea.hbm %s1178_s4, 512 }
  0x6d   : > { %p782_p11 = scmp.ne.s32.totalorder %s1099_s14, %s781_s30  ;;  %p786_p6 = scmp.lt.s32.totalorder %s1099_s14, %s1178_s4 }
  0x6e   : > { %p787_p12 = scmp.lt.s32.totalorder %s785_s8, %s781_s30 }
  0x6f   : > { %p783_p7 = pnand %p782_p11, %p1022_p0 }
  0x70   : > { %p788_p13 = por %p787_p12, %p786_p6 }
  0x71   : > { %p784_p9 = pneg %p783_p7 }
  0x73   : > { %p789_p1 = pnand %p788_p13, %p784_p9 }
  0x75   : > { %792 = shalt.err (!%p789_p1)
}
  0x76   : > { %604 = dma.vmem_to_hbm [thread:$0]  (%p1022_p0), %s1094_s9, 128, %s1099_s14, %s355_s11   ;;  %353 = vst [vmem:[%s338_s28] sm:$0xff] %v352_v6 }
  0x77   : > { %s360_s16 = scalar_lea.sflag [#allocation13], %s1070_s0  ;;  %s793_s21 = scalar_lea.vmem %s1101_s27, 128 }
  0x78   : > { %p794_p4 = scmp.ne.s32.totalorder %s1101_s27, %s793_s21  ;;  %s896_s24 = smov [#allocation12]  }
  0x79   : > { %s797_s12 = sshll.u32 %s896_s24, 4  ;;  %s798_s12 = int_to_ptr.vmem [resolvable:$false] %s797_s12 }
  0x7a   : > { %p795_p8 = pnand %p794_p4, %p1022_p0  ;;  %s799_s2 = scalar_lea.vmem %s798_s12, 256 }
  0x7b   : > { %p800_p10 = scmp.lt.s32.totalorder %s1101_s27, %s798_s12  ;;  %p801_p3 = scmp.lt.s32.totalorder %s799_s2, %s793_s21 }
  0x7c   : > { %p796_p2 = pneg %p795_p8 }
  0x7d   : > { %p802_p5 = por %p801_p3, %p800_p10 }
  0x7f   : > { %p803_p11 = pnand %p802_p5, %p796_p2 }
  0x81   : > { %806 = shalt.err (!%p803_p11)
}
  0x82   : > { %s807_s1 = scalar_lea.hbm %s1106_s17, 128  ;;  %s811_s28 = scalar_lea.hbm %s1179_s5, 512 }
  0x83   : > { %p808_p7 = scmp.ne.s32.totalorder %s1106_s17, %s807_s1  ;;  %p812_p12 = scmp.lt.s32.totalorder %s1106_s17, %s1179_s5 }
  0x84   : > { %p813_p13 = scmp.lt.s32.totalorder %s811_s28, %s807_s1 }
  0x85   : > { %p809_p9 = pnand %p808_p7, %p1022_p0 }
  0x86   : > { %p814_p1 = por %p813_p13, %p812_p12 }
  0x87   : > { %p810_p6 = pneg %p809_p9 }
  0x89   : > { %p815_p4 = pnand %p814_p1, %p810_p6 }
  0x8b   : > { %818 = shalt.err (!%p815_p4)
}
  0x8c   : > { %605 = dma.vmem_to_hbm [thread:$0]  (%p1022_p0), %s1101_s27, 128, %s1106_s17, %s360_s16  }
  0x8d PF: > { %p634_p8 = scmp.ge.s32.totalorder %s889_s23, 2  ;;  %s404_s22 = sand.u32 1, %s869_s18  }
  0x8e   : > { %p1199_p2 = scmp.ne.s32.totalorder %s1189_s29, 0  ;;  %s405_s26 = scalar_lea.sflag [#allocation4], %s404_s22 }
  0x90   : > { %p623_p10 = pnand %p634_p8, %p1199_p2 }
  0x92   : > { %p624_p3 = pneg %p623_p10 }
  0x94   : > { %860 = dma.done.wait (%p624_p3), %s405_s26, 128  }
  0x95   : > { %862 = vsyncadd (%p624_p3), %s405_s26, 4294967168  ;;  %s414_s30 = scalar_lea.sflag [#allocation13], %s404_s22 }
  0x96   : > { %864 = dma.done.wait (%p624_p3), %s414_s30, 128  }
  0x97   : > { %866 = vsyncadd (%p624_p3), %s414_s30, 4294967168  ;;  %s30_s23 = sadd.s32 1, %s889_s23   ;;  %s1200_s21 = sld [smem:[#allocation20_spill]] }
  0x98   : > { %p27_p5 = scmp.ge.s32.totalorder %s30_s23, 6   ;;  %s1201_s22 = sld [smem:[#allocation21_spill]] }
  0x99   : > { %s1202_s18 = smov %s873_s19  ;;  %s1203_s19 = smov %s877_s20 }
  0x9a   : > { %s1204_s20 = smov %s1028_s6  ;;  %29 = sbr.rel (!%p27_p5) target bundleno = 16 (0x10), region = 121 }
  0x9f   :  { %419 = vsyncpa [#allocation3], 1 }
  0xa0   :  { %421 = vsyncpa [#allocation3 + $0x1], 1 }
  0xa1   :  { %422 = vsyncpa [#allocation10], 1 }
  0xa2   :  { %424 = vsyncpa [#allocation10 + $0x1], 1 }
  0xa3   :  { %425 = vsyncpa [#allocation4], 1 }
  0xa4   :  { %427 = vsyncpa [#allocation4 + $0x1], 1 }
  0xa5   :  { %428 = vsyncpa [#allocation13], 1 }
  0xa6   :  { %430 = vsyncpa [#allocation13 + $0x1], 1 }
  0xa7   :  { %431 = vsyncpa [#allocation5], 1 }
  0xa8   :  { %433 = vsyncpa [#allocation5 + $0x1], 1 }
  0xa9   :  { %434 = vsyncpa [#allocation6], 1 }
  0xaa   :  { %436 = vsyncpa [#allocation6 + $0x1], 1 }

</bundles_post_ra>
